<compile_context>
chip_gen: v7x
topology: tpu7x:2x2x1
jax: 0.10.0
libtpu: 0.0.40
codegen_flags: <defaults>
</compile_context>

<pallas_src>
import jax
import jax.numpy as jnp
import numpy as np
from jax.experimental import pallas as pl
from jax.experimental.pallas import tpu as pltpu


def lstm_xor_kernel(x_ref, params_ref, state_ref, out_ref):
    S, B = x_ref.shape[0], x_ref.shape[1]
    H = state_ref.shape[2]

    p = params_ref[...]                       # (5, H+2, H) packed parameters
    w_hh = p[0:4, 0:H, :]                     # (4, H, H): w_hh[g, j, k] = W_hh[g*H+k, j]
    w_ih = p[0:4, H:H + 1, :]                 # (4, 1, H)  input weights (input_size = 1)
    bias = p[0:4, H + 1:H + 2, :]             # (4, 1, H)  b_ih + b_hh, gate-major
    w_lin = p[4, 0:1, :]                      # (1, H)     final linear weight
    b_lin = p[4, 1:2, 0:1]                    # (1, 1)     final linear bias

    x_all = x_ref[...]                        # (S, B, 1)
    st = state_ref[...]                       # (2, B, H)
    h = st[0]                                 # (B, H)
    c = st[1]                                 # (B, H)

    # Hoisted input contribution (all timesteps at once, off the serial chain):
    #   gates_x[t, g, b, k] = x[t, b] * W_ih[g*H + k] + bias[g, k]
    gates_x = (x_all[:, None, :, :] * w_ih[None, :, :, :]
               + bias[None, :, :, :])         # (S, 4, B, H)

    # Loop-invariant per-hidden-unit recurrent weight rows.
    w_hh_rows = [w_hh[:, j:j + 1, :] for j in range(H)]   # each (4, 1, H)

    # Fully-unrolled recurrence (S and H are small compile-time constants).
    for t in range(S):
        # Recurrent term on the VPU: rec[g, b, k] = sum_j h[b, j] * w_hh[g, j, k]
        rec = h[None, :, 0:1] * w_hh_rows[0]
        for j in range(1, H):
            rec = rec + h[None, :, j:j + 1] * w_hh_rows[j]
        gates = gates_x[t] + rec              # (4, B, H), gate order [i, f, g, o]
        i_g = jax.nn.sigmoid(gates[0])
        f_g = jax.nn.sigmoid(gates[1])
        g_g = jnp.tanh(gates[2])
        o_g = jax.nn.sigmoid(gates[3])
        c = f_g * c + i_g * g_g
        h = o_g * jnp.tanh(c)

    # Linear(hidden, 1) + sigmoid as a lane reduction (no second MXU round-trip).
    logit = jnp.sum(h * w_lin, axis=-1, keepdims=True) + b_lin   # (B, 1)
    out_ref[...] = jax.nn.sigmoid(logit)


def lstm_xor_forward(x, params):
    """x: (S, B, 1) float32 (PyTorch layout). Returns (B, 1) float32."""
    (w_ih, w_hh, b_ih, b_hh, w_lin, b_lin, h0, c0) = params
    S, B = x.shape[0], x.shape[1]
    H = h0.shape[-1]

    # ---- one-time parameter repacking (plain JAX glue, outside the kernel) ----
    # Gate-major recurrent weights: w_hh_gm[g, j, k] = W_hh[g*H + k, j]
    w_hh_gm = w_hh.reshape(4, H, H).transpose(0, 2, 1)   # (4, H, H)
    w_ih_gm = w_ih.reshape(4, H)                         # (4, H)
    b_gm = (b_ih + b_hh).reshape(4, H)                   # (4, H)

    # Single packed parameter buffer: (5, H+2, H)
    #   slots 0..3 (per gate g): rows [0:H] = w_hh_gm[g], row H = w_ih_gm[g],
    #                            row H+1 = b_gm[g]
    #   slot 4: row 0 = linear weight row, element [1, 0] = linear bias
    pack = jnp.zeros((5, H + 2, H), jnp.float32)
    pack = pack.at[0:4, 0:H, :].set(w_hh_gm)
    pack = pack.at[0:4, H, :].set(w_ih_gm)
    pack = pack.at[0:4, H + 1, :].set(b_gm)
    pack = pack.at[4, 0, :].set(w_lin.reshape(H))
    pack = pack.at[4, 1, 0].set(b_lin.reshape(()))

    # h0 and c0 stacked into one buffer.
    state0 = jnp.stack([h0.reshape(B, H), c0.reshape(B, H)], axis=0)  # (2, B, H)

    vmem = pl.BlockSpec(memory_space=pltpu.MemorySpace.VMEM)
    return pl.pallas_call(
        lstm_xor_kernel,
        out_shape=jax.ShapeDtypeStruct((B, 1), jnp.float32),
        in_specs=[vmem, vmem, vmem],
        out_specs=vmem,
    )(x.astype(jnp.float32), pack, state0.astype(jnp.float32))


def make_params(key, hidden_size, batch_size):
    """Deterministic parameter init (PyTorch-style uniform(-k, k), k=1/sqrt(H))."""
    H = hidden_size
    k = 1.0 / np.sqrt(H)
    keys = jax.random.split(key, 8)
    w_ih = jax.random.uniform(keys[0], (4 * H, 1), jnp.float32, -k, k)
    w_hh = jax.random.uniform(keys[1], (4 * H, H), jnp.float32, -k, k)
    b_ih = jax.random.uniform(keys[2], (4 * H,), jnp.float32, -k, k)
    b_hh = jax.random.uniform(keys[3], (4 * H,), jnp.float32, -k, k)
    w_lin = jax.random.uniform(keys[4], (1, H), jnp.float32, -k, k)
    b_lin = jax.random.uniform(keys[5], (1,), jnp.float32, -k, k)
    # init_hidden(): standard-normal (1, batch, hidden) for both h0 and c0
    h0 = jax.random.normal(keys[6], (1, batch_size, H), jnp.float32)
    c0 = jax.random.normal(keys[7], (1, batch_size, H), jnp.float32)
    return (w_ih, w_hh, b_ih, b_hh, w_lin, b_lin, h0, c0)


def reference_forward(x, params):
    """Pure-JAX reference of the same semantics (sanity check). x: (S, B, 1)."""
    (w_ih, w_hh, b_ih, b_hh, w_lin, b_lin, h0, c0) = params
    H = h0.shape[-1]
    B = x.shape[1]
    h = h0.reshape(B, H)
    c = c0.reshape(B, H)
    for t in range(x.shape[0]):
        x_t = x[t].reshape(B, 1)
        gates = x_t @ w_ih.T + h @ w_hh.T + b_ih + b_hh
        i = jax.nn.sigmoid(gates[:, 0 * H:1 * H])
        f = jax.nn.sigmoid(gates[:, 1 * H:2 * H])
        g = jnp.tanh(gates[:, 2 * H:3 * H])
        o = jax.nn.sigmoid(gates[:, 3 * H:4 * H])
        c = f * c + i * g
        h = o * jnp.tanh(c)
    return jax.nn.sigmoid(h @ w_lin.T + b_lin)


if __name__ == "__main__":
    hidden_size = 2
    batch_size = 8
    seq_len = 8

    key = jax.random.PRNGKey(0)
    k_x, k_p = jax.random.split(key)

    # PyTorch input convention: (seq, batch, input_size=1); XOR-style 0/1 bits.
    x = jax.random.bernoulli(k_x, 0.5, (seq_len, batch_size, 1)).astype(jnp.float32)

    params = make_params(k_p, hidden_size, batch_size)

    score = jax.jit(lstm_xor_forward)(x, params)
    score = jax.block_until_ready(score)

    ref = jax.block_until_ready(reference_forward(x, params))
    np.testing.assert_allclose(np.asarray(score), np.asarray(ref),
                               rtol=1e-5, atol=1e-5)
    assert score.shape == (batch_size, 1)

    print("KERNEL_OK")
</pallas_src>

<mosaic_0001>
module attributes {stable_mosaic.version = 11 : i64} {
  func.func @lstm_xor_kernel(%arg0: memref<8x8x1xf32, #tpu.memory_space<vmem>>, %arg1: memref<5x4x2xf32, #tpu.memory_space<vmem>>, %arg2: memref<2x8x2xf32, #tpu.memory_space<vmem>>, %arg3: memref<8x1xf32, #tpu.memory_space<vmem>>) attributes {dimension_semantics = [], scalar_prefetch = 0 : i64, scratch_operands = 0 : i64, tpu.core_type = #tpu.core_type<tc>} {
    %c0 = arith.constant 0 : index
    %c0_0 = arith.constant 0 : index
    %c0_1 = arith.constant 0 : index
    %0 = vector.load %arg1[%c0, %c0_0, %c0_1] : memref<5x4x2xf32, #tpu.memory_space<vmem>>, vector<5x4x2xf32>
    %1 = vector.extract_strided_slice %0 {offsets = [0, 0, 0], sizes = [4, 2, 2], strides = [1, 1, 1]} : vector<5x4x2xf32> to vector<4x2x2xf32>
    %2 = vector.extract_strided_slice %0 {offsets = [0, 2, 0], sizes = [4, 1, 2], strides = [1, 1, 1]} : vector<5x4x2xf32> to vector<4x1x2xf32>
    %3 = vector.extract_strided_slice %0 {offsets = [0, 3, 0], sizes = [4, 1, 2], strides = [1, 1, 1]} : vector<5x4x2xf32> to vector<4x1x2xf32>
    %4 = vector.extract_strided_slice %0 {offsets = [4, 0, 0], sizes = [1, 1, 2], strides = [1, 1, 1]} : vector<5x4x2xf32> to vector<1x1x2xf32>
    %5 = vector.shape_cast %4 : vector<1x1x2xf32> to vector<1x2xf32>
    %6 = vector.extract_strided_slice %0 {offsets = [4, 1, 0], sizes = [1, 1, 1], strides = [1, 1, 1]} : vector<5x4x2xf32> to vector<1x1x1xf32>
    %7 = vector.shape_cast %6 : vector<1x1x1xf32> to vector<1x1xf32>
    %c0_2 = arith.constant 0 : index
    %c0_3 = arith.constant 0 : index
    %c0_4 = arith.constant 0 : index
    %8 = vector.load %arg0[%c0_2, %c0_3, %c0_4] : memref<8x8x1xf32, #tpu.memory_space<vmem>>, vector<8x8x1xf32>
    %c0_5 = arith.constant 0 : index
    %c0_6 = arith.constant 0 : index
    %c0_7 = arith.constant 0 : index
    %9 = vector.load %arg2[%c0_5, %c0_6, %c0_7] : memref<2x8x2xf32, #tpu.memory_space<vmem>>, vector<2x8x2xf32>
    %10 = vector.extract_strided_slice %9 {offsets = [0, 0, 0], sizes = [1, 8, 2], strides = [1, 1, 1]} : vector<2x8x2xf32> to vector<1x8x2xf32>
    %11 = vector.shape_cast %10 : vector<1x8x2xf32> to vector<8x2xf32>
    %12 = vector.extract_strided_slice %9 {offsets = [1, 0, 0], sizes = [1, 8, 2], strides = [1, 1, 1]} : vector<2x8x2xf32> to vector<1x8x2xf32>
    %13 = vector.shape_cast %12 : vector<1x8x2xf32> to vector<8x2xf32>
    %14 = vector.shape_cast %8 : vector<8x8x1xf32> to vector<8x1x8x1xf32>
    %15 = vector.shape_cast %2 : vector<4x1x2xf32> to vector<1x4x1x2xf32>
    %16 = vector.broadcast %14 : vector<8x1x8x1xf32> to vector<8x4x8x2xf32>
    %17 = vector.broadcast %15 : vector<1x4x1x2xf32> to vector<8x4x8x2xf32>
    %18 = arith.mulf %16, %17 : vector<8x4x8x2xf32>
    %19 = vector.shape_cast %3 : vector<4x1x2xf32> to vector<1x4x1x2xf32>
    %20 = vector.broadcast %19 : vector<1x4x1x2xf32> to vector<8x4x8x2xf32>
    %21 = arith.addf %18, %20 : vector<8x4x8x2xf32>
    %22 = vector.extract_strided_slice %1 {offsets = [0, 0, 0], sizes = [4, 1, 2], strides = [1, 1, 1]} : vector<4x2x2xf32> to vector<4x1x2xf32>
    %23 = vector.extract_strided_slice %1 {offsets = [0, 1, 0], sizes = [4, 1, 2], strides = [1, 1, 1]} : vector<4x2x2xf32> to vector<4x1x2xf32>
    %24 = vector.extract_strided_slice %11 {offsets = [0, 0], sizes = [8, 1], strides = [1, 1]} : vector<8x2xf32> to vector<8x1xf32>
    %25 = vector.shape_cast %24 : vector<8x1xf32> to vector<1x8x1xf32>
    %26 = vector.broadcast %25 : vector<1x8x1xf32> to vector<4x8x2xf32>
    %27 = vector.broadcast %22 : vector<4x1x2xf32> to vector<4x8x2xf32>
    %28 = arith.mulf %26, %27 : vector<4x8x2xf32>
    %29 = vector.extract_strided_slice %11 {offsets = [0, 1], sizes = [8, 1], strides = [1, 1]} : vector<8x2xf32> to vector<8x1xf32>
    %30 = vector.shape_cast %29 : vector<8x1xf32> to vector<1x8x1xf32>
    %31 = vector.broadcast %30 : vector<1x8x1xf32> to vector<4x8x2xf32>
    %32 = vector.broadcast %23 : vector<4x1x2xf32> to vector<4x8x2xf32>
    %33 = arith.mulf %31, %32 : vector<4x8x2xf32>
    %34 = arith.addf %28, %33 : vector<4x8x2xf32>
    %35 = vector.extract_strided_slice %21 {offsets = [0, 0, 0, 0], sizes = [1, 4, 8, 2], strides = [1, 1, 1, 1]} : vector<8x4x8x2xf32> to vector<1x4x8x2xf32>
    %36 = vector.shape_cast %35 : vector<1x4x8x2xf32> to vector<4x8x2xf32>
    %37 = arith.addf %36, %34 : vector<4x8x2xf32>
    %38 = vector.extract_strided_slice %37 {offsets = [0, 0, 0], sizes = [1, 8, 2], strides = [1, 1, 1]} : vector<4x8x2xf32> to vector<1x8x2xf32>
    %39 = vector.shape_cast %38 : vector<1x8x2xf32> to vector<8x2xf32>
    %40 = arith.negf %39 : vector<8x2xf32>
    %41 = math.exp %40 : vector<8x2xf32>
    %cst = arith.constant 1.000000e+00 : f32
    %42 = vector.broadcast %cst : f32 to vector<8x2xf32>
    %43 = arith.addf %42, %41 : vector<8x2xf32>
    %44 = arith.divf %42, %43 : vector<8x2xf32>
    %45 = vector.extract_strided_slice %37 {offsets = [1, 0, 0], sizes = [1, 8, 2], strides = [1, 1, 1]} : vector<4x8x2xf32> to vector<1x8x2xf32>
    %46 = vector.shape_cast %45 : vector<1x8x2xf32> to vector<8x2xf32>
    %47 = arith.negf %46 : vector<8x2xf32>
    %48 = math.exp %47 : vector<8x2xf32>
    %cst_8 = arith.constant 1.000000e+00 : f32
    %49 = vector.broadcast %cst_8 : f32 to vector<8x2xf32>
    %50 = arith.addf %49, %48 : vector<8x2xf32>
    %51 = arith.divf %49, %50 : vector<8x2xf32>
    %52 = vector.extract_strided_slice %37 {offsets = [2, 0, 0], sizes = [1, 8, 2], strides = [1, 1, 1]} : vector<4x8x2xf32> to vector<1x8x2xf32>
    %53 = vector.shape_cast %52 : vector<1x8x2xf32> to vector<8x2xf32>
    %54 = math.tanh %53 : vector<8x2xf32>
    %55 = vector.extract_strided_slice %37 {offsets = [3, 0, 0], sizes = [1, 8, 2], strides = [1, 1, 1]} : vector<4x8x2xf32> to vector<1x8x2xf32>
    %56 = vector.shape_cast %55 : vector<1x8x2xf32> to vector<8x2xf32>
    %57 = arith.negf %56 : vector<8x2xf32>
    %58 = math.exp %57 : vector<8x2xf32>
    %cst_9 = arith.constant 1.000000e+00 : f32
    %59 = vector.broadcast %cst_9 : f32 to vector<8x2xf32>
    %60 = arith.addf %59, %58 : vector<8x2xf32>
    %61 = arith.divf %59, %60 : vector<8x2xf32>
    %62 = arith.mulf %51, %13 : vector<8x2xf32>
    %63 = arith.mulf %44, %54 : vector<8x2xf32>
    %64 = arith.addf %62, %63 : vector<8x2xf32>
    %65 = math.tanh %64 : vector<8x2xf32>
    %66 = arith.mulf %61, %65 : vector<8x2xf32>
    %67 = vector.extract_strided_slice %66 {offsets = [0, 0], sizes = [8, 1], strides = [1, 1]} : vector<8x2xf32> to vector<8x1xf32>
    %68 = vector.shape_cast %67 : vector<8x1xf32> to vector<1x8x1xf32>
    %69 = vector.broadcast %68 : vector<1x8x1xf32> to vector<4x8x2xf32>
    %70 = vector.broadcast %22 : vector<4x1x2xf32> to vector<4x8x2xf32>
    %71 = arith.mulf %69, %70 : vector<4x8x2xf32>
    %72 = vector.extract_strided_slice %66 {offsets = [0, 1], sizes = [8, 1], strides = [1, 1]} : vector<8x2xf32> to vector<8x1xf32>
    %73 = vector.shape_cast %72 : vector<8x1xf32> to vector<1x8x1xf32>
    %74 = vector.broadcast %73 : vector<1x8x1xf32> to vector<4x8x2xf32>
    %75 = vector.broadcast %23 : vector<4x1x2xf32> to vector<4x8x2xf32>
    %76 = arith.mulf %74, %75 : vector<4x8x2xf32>
    %77 = arith.addf %71, %76 : vector<4x8x2xf32>
    %78 = vector.extract_strided_slice %21 {offsets = [1, 0, 0, 0], sizes = [1, 4, 8, 2], strides = [1, 1, 1, 1]} : vector<8x4x8x2xf32> to vector<1x4x8x2xf32>
    %79 = vector.shape_cast %78 : vector<1x4x8x2xf32> to vector<4x8x2xf32>
    %80 = arith.addf %79, %77 : vector<4x8x2xf32>
    %81 = vector.extract_strided_slice %80 {offsets = [0, 0, 0], sizes = [1, 8, 2], strides = [1, 1, 1]} : vector<4x8x2xf32> to vector<1x8x2xf32>
    %82 = vector.shape_cast %81 : vector<1x8x2xf32> to vector<8x2xf32>
    %83 = arith.negf %82 : vector<8x2xf32>
    %84 = math.exp %83 : vector<8x2xf32>
    %cst_10 = arith.constant 1.000000e+00 : f32
    %85 = vector.broadcast %cst_10 : f32 to vector<8x2xf32>
    %86 = arith.addf %85, %84 : vector<8x2xf32>
    %87 = arith.divf %85, %86 : vector<8x2xf32>
    %88 = vector.extract_strided_slice %80 {offsets = [1, 0, 0], sizes = [1, 8, 2], strides = [1, 1, 1]} : vector<4x8x2xf32> to vector<1x8x2xf32>
    %89 = vector.shape_cast %88 : vector<1x8x2xf32> to vector<8x2xf32>
    %90 = arith.negf %89 : vector<8x2xf32>
    %91 = math.exp %90 : vector<8x2xf32>
    %cst_11 = arith.constant 1.000000e+00 : f32
    %92 = vector.broadcast %cst_11 : f32 to vector<8x2xf32>
    %93 = arith.addf %92, %91 : vector<8x2xf32>
    %94 = arith.divf %92, %93 : vector<8x2xf32>
    %95 = vector.extract_strided_slice %80 {offsets = [2, 0, 0], sizes = [1, 8, 2], strides = [1, 1, 1]} : vector<4x8x2xf32> to vector<1x8x2xf32>
    %96 = vector.shape_cast %95 : vector<1x8x2xf32> to vector<8x2xf32>
    %97 = math.tanh %96 : vector<8x2xf32>
    %98 = vector.extract_strided_slice %80 {offsets = [3, 0, 0], sizes = [1, 8, 2], strides = [1, 1, 1]} : vector<4x8x2xf32> to vector<1x8x2xf32>
    %99 = vector.shape_cast %98 : vector<1x8x2xf32> to vector<8x2xf32>
    %100 = arith.negf %99 : vector<8x2xf32>
    %101 = math.exp %100 : vector<8x2xf32>
    %cst_12 = arith.constant 1.000000e+00 : f32
    %102 = vector.broadcast %cst_12 : f32 to vector<8x2xf32>
    %103 = arith.addf %102, %101 : vector<8x2xf32>
    %104 = arith.divf %102, %103 : vector<8x2xf32>
    %105 = arith.mulf %94, %64 : vector<8x2xf32>
    %106 = arith.mulf %87, %97 : vector<8x2xf32>
    %107 = arith.addf %105, %106 : vector<8x2xf32>
    %108 = math.tanh %107 : vector<8x2xf32>
    %109 = arith.mulf %104, %108 : vector<8x2xf32>
    %110 = vector.extract_strided_slice %109 {offsets = [0, 0], sizes = [8, 1], strides = [1, 1]} : vector<8x2xf32> to vector<8x1xf32>
    %111 = vector.shape_cast %110 : vector<8x1xf32> to vector<1x8x1xf32>
    %112 = vector.broadcast %111 : vector<1x8x1xf32> to vector<4x8x2xf32>
    %113 = vector.broadcast %22 : vector<4x1x2xf32> to vector<4x8x2xf32>
    %114 = arith.mulf %112, %113 : vector<4x8x2xf32>
    %115 = vector.extract_strided_slice %109 {offsets = [0, 1], sizes = [8, 1], strides = [1, 1]} : vector<8x2xf32> to vector<8x1xf32>
    %116 = vector.shape_cast %115 : vector<8x1xf32> to vector<1x8x1xf32>
    %117 = vector.broadcast %116 : vector<1x8x1xf32> to vector<4x8x2xf32>
    %118 = vector.broadcast %23 : vector<4x1x2xf32> to vector<4x8x2xf32>
    %119 = arith.mulf %117, %118 : vector<4x8x2xf32>
    %120 = arith.addf %114, %119 : vector<4x8x2xf32>
    %121 = vector.extract_strided_slice %21 {offsets = [2, 0, 0, 0], sizes = [1, 4, 8, 2], strides = [1, 1, 1, 1]} : vector<8x4x8x2xf32> to vector<1x4x8x2xf32>
    %122 = vector.shape_cast %121 : vector<1x4x8x2xf32> to vector<4x8x2xf32>
    %123 = arith.addf %122, %120 : vector<4x8x2xf32>
    %124 = vector.extract_strided_slice %123 {offsets = [0, 0, 0], sizes = [1, 8, 2], strides = [1, 1, 1]} : vector<4x8x2xf32> to vector<1x8x2xf32>
    %125 = vector.shape_cast %124 : vector<1x8x2xf32> to vector<8x2xf32>
    %126 = arith.negf %125 : vector<8x2xf32>
    %127 = math.exp %126 : vector<8x2xf32>
    %cst_13 = arith.constant 1.000000e+00 : f32
    %128 = vector.broadcast %cst_13 : f32 to vector<8x2xf32>
    %129 = arith.addf %128, %127 : vector<8x2xf32>
    %130 = arith.divf %128, %129 : vector<8x2xf32>
    %131 = vector.extract_strided_slice %123 {offsets = [1, 0, 0], sizes = [1, 8, 2], strides = [1, 1, 1]} : vector<4x8x2xf32> to vector<1x8x2xf32>
    %132 = vector.shape_cast %131 : vector<1x8x2xf32> to vector<8x2xf32>
    %133 = arith.negf %132 : vector<8x2xf32>
    %134 = math.exp %133 : vector<8x2xf32>
    %cst_14 = arith.constant 1.000000e+00 : f32
    %135 = vector.broadcast %cst_14 : f32 to vector<8x2xf32>
    %136 = arith.addf %135, %134 : vector<8x2xf32>
    %137 = arith.divf %135, %136 : vector<8x2xf32>
    %138 = vector.extract_strided_slice %123 {offsets = [2, 0, 0], sizes = [1, 8, 2], strides = [1, 1, 1]} : vector<4x8x2xf32> to vector<1x8x2xf32>
    %139 = vector.shape_cast %138 : vector<1x8x2xf32> to vector<8x2xf32>
    %140 = math.tanh %139 : vector<8x2xf32>
    %141 = vector.extract_strided_slice %123 {offsets = [3, 0, 0], sizes = [1, 8, 2], strides = [1, 1, 1]} : vector<4x8x2xf32> to vector<1x8x2xf32>
    %142 = vector.shape_cast %141 : vector<1x8x2xf32> to vector<8x2xf32>
    %143 = arith.negf %142 : vector<8x2xf32>
    %144 = math.exp %143 : vector<8x2xf32>
    %cst_15 = arith.constant 1.000000e+00 : f32
    %145 = vector.broadcast %cst_15 : f32 to vector<8x2xf32>
    %146 = arith.addf %145, %144 : vector<8x2xf32>
    %147 = arith.divf %145, %146 : vector<8x2xf32>
    %148 = arith.mulf %137, %107 : vector<8x2xf32>
    %149 = arith.mulf %130, %140 : vector<8x2xf32>
    %150 = arith.addf %148, %149 : vector<8x2xf32>
    %151 = math.tanh %150 : vector<8x2xf32>
    %152 = arith.mulf %147, %151 : vector<8x2xf32>
    %153 = vector.extract_strided_slice %152 {offsets = [0, 0], sizes = [8, 1], strides = [1, 1]} : vector<8x2xf32> to vector<8x1xf32>
    %154 = vector.shape_cast %153 : vector<8x1xf32> to vector<1x8x1xf32>
    %155 = vector.broadcast %154 : vector<1x8x1xf32> to vector<4x8x2xf32>
    %156 = vector.broadcast %22 : vector<4x1x2xf32> to vector<4x8x2xf32>
    %157 = arith.mulf %155, %156 : vector<4x8x2xf32>
    %158 = vector.extract_strided_slice %152 {offsets = [0, 1], sizes = [8, 1], strides = [1, 1]} : vector<8x2xf32> to vector<8x1xf32>
    %159 = vector.shape_cast %158 : vector<8x1xf32> to vector<1x8x1xf32>
    %160 = vector.broadcast %159 : vector<1x8x1xf32> to vector<4x8x2xf32>
    %161 = vector.broadcast %23 : vector<4x1x2xf32> to vector<4x8x2xf32>
    %162 = arith.mulf %160, %161 : vector<4x8x2xf32>
    %163 = arith.addf %157, %162 : vector<4x8x2xf32>
    %164 = vector.extract_strided_slice %21 {offsets = [3, 0, 0, 0], sizes = [1, 4, 8, 2], strides = [1, 1, 1, 1]} : vector<8x4x8x2xf32> to vector<1x4x8x2xf32>
    %165 = vector.shape_cast %164 : vector<1x4x8x2xf32> to vector<4x8x2xf32>
    %166 = arith.addf %165, %163 : vector<4x8x2xf32>
    %167 = vector.extract_strided_slice %166 {offsets = [0, 0, 0], sizes = [1, 8, 2], strides = [1, 1, 1]} : vector<4x8x2xf32> to vector<1x8x2xf32>
    %168 = vector.shape_cast %167 : vector<1x8x2xf32> to vector<8x2xf32>
    %169 = arith.negf %168 : vector<8x2xf32>
    %170 = math.exp %169 : vector<8x2xf32>
    %cst_16 = arith.constant 1.000000e+00 : f32
    %171 = vector.broadcast %cst_16 : f32 to vector<8x2xf32>
    %172 = arith.addf %171, %170 : vector<8x2xf32>
    %173 = arith.divf %171, %172 : vector<8x2xf32>
    %174 = vector.extract_strided_slice %166 {offsets = [1, 0, 0], sizes = [1, 8, 2], strides = [1, 1, 1]} : vector<4x8x2xf32> to vector<1x8x2xf32>
    %175 = vector.shape_cast %174 : vector<1x8x2xf32> to vector<8x2xf32>
    %176 = arith.negf %175 : vector<8x2xf32>
    %177 = math.exp %176 : vector<8x2xf32>
    %cst_17 = arith.constant 1.000000e+00 : f32
    %178 = vector.broadcast %cst_17 : f32 to vector<8x2xf32>
    %179 = arith.addf %178, %177 : vector<8x2xf32>
    %180 = arith.divf %178, %179 : vector<8x2xf32>
    %181 = vector.extract_strided_slice %166 {offsets = [2, 0, 0], sizes = [1, 8, 2], strides = [1, 1, 1]} : vector<4x8x2xf32> to vector<1x8x2xf32>
    %182 = vector.shape_cast %181 : vector<1x8x2xf32> to vector<8x2xf32>
    %183 = math.tanh %182 : vector<8x2xf32>
    %184 = vector.extract_strided_slice %166 {offsets = [3, 0, 0], sizes = [1, 8, 2], strides = [1, 1, 1]} : vector<4x8x2xf32> to vector<1x8x2xf32>
    %185 = vector.shape_cast %184 : vector<1x8x2xf32> to vector<8x2xf32>
    %186 = arith.negf %185 : vector<8x2xf32>
    %187 = math.exp %186 : vector<8x2xf32>
    %cst_18 = arith.constant 1.000000e+00 : f32
    %188 = vector.broadcast %cst_18 : f32 to vector<8x2xf32>
    %189 = arith.addf %188, %187 : vector<8x2xf32>
    %190 = arith.divf %188, %189 : vector<8x2xf32>
    %191 = arith.mulf %180, %150 : vector<8x2xf32>
    %192 = arith.mulf %173, %183 : vector<8x2xf32>
    %193 = arith.addf %191, %192 : vector<8x2xf32>
    %194 = math.tanh %193 : vector<8x2xf32>
    %195 = arith.mulf %190, %194 : vector<8x2xf32>
    %196 = vector.extract_strided_slice %195 {offsets = [0, 0], sizes = [8, 1], strides = [1, 1]} : vector<8x2xf32> to vector<8x1xf32>
    %197 = vector.shape_cast %196 : vector<8x1xf32> to vector<1x8x1xf32>
    %198 = vector.broadcast %197 : vector<1x8x1xf32> to vector<4x8x2xf32>
    %199 = vector.broadcast %22 : vector<4x1x2xf32> to vector<4x8x2xf32>
    %200 = arith.mulf %198, %199 : vector<4x8x2xf32>
    %201 = vector.extract_strided_slice %195 {offsets = [0, 1], sizes = [8, 1], strides = [1, 1]} : vector<8x2xf32> to vector<8x1xf32>
    %202 = vector.shape_cast %201 : vector<8x1xf32> to vector<1x8x1xf32>
    %203 = vector.broadcast %202 : vector<1x8x1xf32> to vector<4x8x2xf32>
    %204 = vector.broadcast %23 : vector<4x1x2xf32> to vector<4x8x2xf32>
    %205 = arith.mulf %203, %204 : vector<4x8x2xf32>
    %206 = arith.addf %200, %205 : vector<4x8x2xf32>
    %207 = vector.extract_strided_slice %21 {offsets = [4, 0, 0, 0], sizes = [1, 4, 8, 2], strides = [1, 1, 1, 1]} : vector<8x4x8x2xf32> to vector<1x4x8x2xf32>
    %208 = vector.shape_cast %207 : vector<1x4x8x2xf32> to vector<4x8x2xf32>
    %209 = arith.addf %208, %206 : vector<4x8x2xf32>
    %210 = vector.extract_strided_slice %209 {offsets = [0, 0, 0], sizes = [1, 8, 2], strides = [1, 1, 1]} : vector<4x8x2xf32> to vector<1x8x2xf32>
    %211 = vector.shape_cast %210 : vector<1x8x2xf32> to vector<8x2xf32>
    %212 = arith.negf %211 : vector<8x2xf32>
    %213 = math.exp %212 : vector<8x2xf32>
    %cst_19 = arith.constant 1.000000e+00 : f32
    %214 = vector.broadcast %cst_19 : f32 to vector<8x2xf32>
    %215 = arith.addf %214, %213 : vector<8x2xf32>
    %216 = arith.divf %214, %215 : vector<8x2xf32>
    %217 = vector.extract_strided_slice %209 {offsets = [1, 0, 0], sizes = [1, 8, 2], strides = [1, 1, 1]} : vector<4x8x2xf32> to vector<1x8x2xf32>
    %218 = vector.shape_cast %217 : vector<1x8x2xf32> to vector<8x2xf32>
    %219 = arith.negf %218 : vector<8x2xf32>
    %220 = math.exp %219 : vector<8x2xf32>
    %cst_20 = arith.constant 1.000000e+00 : f32
    %221 = vector.broadcast %cst_20 : f32 to vector<8x2xf32>
    %222 = arith.addf %221, %220 : vector<8x2xf32>
    %223 = arith.divf %221, %222 : vector<8x2xf32>
    %224 = vector.extract_strided_slice %209 {offsets = [2, 0, 0], sizes = [1, 8, 2], strides = [1, 1, 1]} : vector<4x8x2xf32> to vector<1x8x2xf32>
    %225 = vector.shape_cast %224 : vector<1x8x2xf32> to vector<8x2xf32>
    %226 = math.tanh %225 : vector<8x2xf32>
    %227 = vector.extract_strided_slice %209 {offsets = [3, 0, 0], sizes = [1, 8, 2], strides = [1, 1, 1]} : vector<4x8x2xf32> to vector<1x8x2xf32>
    %228 = vector.shape_cast %227 : vector<1x8x2xf32> to vector<8x2xf32>
    %229 = arith.negf %228 : vector<8x2xf32>
    %230 = math.exp %229 : vector<8x2xf32>
    %cst_21 = arith.constant 1.000000e+00 : f32
    %231 = vector.broadcast %cst_21 : f32 to vector<8x2xf32>
    %232 = arith.addf %231, %230 : vector<8x2xf32>
    %233 = arith.divf %231, %232 : vector<8x2xf32>
    %234 = arith.mulf %223, %193 : vector<8x2xf32>
    %235 = arith.mulf %216, %226 : vector<8x2xf32>
    %236 = arith.addf %234, %235 : vector<8x2xf32>
    %237 = math.tanh %236 : vector<8x2xf32>
    %238 = arith.mulf %233, %237 : vector<8x2xf32>
    %239 = vector.extract_strided_slice %238 {offsets = [0, 0], sizes = [8, 1], strides = [1, 1]} : vector<8x2xf32> to vector<8x1xf32>
    %240 = vector.shape_cast %239 : vector<8x1xf32> to vector<1x8x1xf32>
    %241 = vector.broadcast %240 : vector<1x8x1xf32> to vector<4x8x2xf32>
    %242 = vector.broadcast %22 : vector<4x1x2xf32> to vector<4x8x2xf32>
    %243 = arith.mulf %241, %242 : vector<4x8x2xf32>
    %244 = vector.extract_strided_slice %238 {offsets = [0, 1], sizes = [8, 1], strides = [1, 1]} : vector<8x2xf32> to vector<8x1xf32>
    %245 = vector.shape_cast %244 : vector<8x1xf32> to vector<1x8x1xf32>
    %246 = vector.broadcast %245 : vector<1x8x1xf32> to vector<4x8x2xf32>
    %247 = vector.broadcast %23 : vector<4x1x2xf32> to vector<4x8x2xf32>
    %248 = arith.mulf %246, %247 : vector<4x8x2xf32>
    %249 = arith.addf %243, %248 : vector<4x8x2xf32>
    %250 = vector.extract_strided_slice %21 {offsets = [5, 0, 0, 0], sizes = [1, 4, 8, 2], strides = [1, 1, 1, 1]} : vector<8x4x8x2xf32> to vector<1x4x8x2xf32>
    %251 = vector.shape_cast %250 : vector<1x4x8x2xf32> to vector<4x8x2xf32>
    %252 = arith.addf %251, %249 : vector<4x8x2xf32>
    %253 = vector.extract_strided_slice %252 {offsets = [0, 0, 0], sizes = [1, 8, 2], strides = [1, 1, 1]} : vector<4x8x2xf32> to vector<1x8x2xf32>
    %254 = vector.shape_cast %253 : vector<1x8x2xf32> to vector<8x2xf32>
    %255 = arith.negf %254 : vector<8x2xf32>
    %256 = math.exp %255 : vector<8x2xf32>
    %cst_22 = arith.constant 1.000000e+00 : f32
    %257 = vector.broadcast %cst_22 : f32 to vector<8x2xf32>
    %258 = arith.addf %257, %256 : vector<8x2xf32>
    %259 = arith.divf %257, %258 : vector<8x2xf32>
    %260 = vector.extract_strided_slice %252 {offsets = [1, 0, 0], sizes = [1, 8, 2], strides = [1, 1, 1]} : vector<4x8x2xf32> to vector<1x8x2xf32>
    %261 = vector.shape_cast %260 : vector<1x8x2xf32> to vector<8x2xf32>
    %262 = arith.negf %261 : vector<8x2xf32>
    %263 = math.exp %262 : vector<8x2xf32>
    %cst_23 = arith.constant 1.000000e+00 : f32
    %264 = vector.broadcast %cst_23 : f32 to vector<8x2xf32>
    %265 = arith.addf %264, %263 : vector<8x2xf32>
    %266 = arith.divf %264, %265 : vector<8x2xf32>
    %267 = vector.extract_strided_slice %252 {offsets = [2, 0, 0], sizes = [1, 8, 2], strides = [1, 1, 1]} : vector<4x8x2xf32> to vector<1x8x2xf32>
    %268 = vector.shape_cast %267 : vector<1x8x2xf32> to vector<8x2xf32>
    %269 = math.tanh %268 : vector<8x2xf32>
    %270 = vector.extract_strided_slice %252 {offsets = [3, 0, 0], sizes = [1, 8, 2], strides = [1, 1, 1]} : vector<4x8x2xf32> to vector<1x8x2xf32>
    %271 = vector.shape_cast %270 : vector<1x8x2xf32> to vector<8x2xf32>
    %272 = arith.negf %271 : vector<8x2xf32>
    %273 = math.exp %272 : vector<8x2xf32>
    %cst_24 = arith.constant 1.000000e+00 : f32
    %274 = vector.broadcast %cst_24 : f32 to vector<8x2xf32>
    %275 = arith.addf %274, %273 : vector<8x2xf32>
    %276 = arith.divf %274, %275 : vector<8x2xf32>
    %277 = arith.mulf %266, %236 : vector<8x2xf32>
    %278 = arith.mulf %259, %269 : vector<8x2xf32>
    %279 = arith.addf %277, %278 : vector<8x2xf32>
    %280 = math.tanh %279 : vector<8x2xf32>
    %281 = arith.mulf %276, %280 : vector<8x2xf32>
    %282 = vector.extract_strided_slice %281 {offsets = [0, 0], sizes = [8, 1], strides = [1, 1]} : vector<8x2xf32> to vector<8x1xf32>
    %283 = vector.shape_cast %282 : vector<8x1xf32> to vector<1x8x1xf32>
    %284 = vector.broadcast %283 : vector<1x8x1xf32> to vector<4x8x2xf32>
    %285 = vector.broadcast %22 : vector<4x1x2xf32> to vector<4x8x2xf32>
    %286 = arith.mulf %284, %285 : vector<4x8x2xf32>
    %287 = vector.extract_strided_slice %281 {offsets = [0, 1], sizes = [8, 1], strides = [1, 1]} : vector<8x2xf32> to vector<8x1xf32>
    %288 = vector.shape_cast %287 : vector<8x1xf32> to vector<1x8x1xf32>
    %289 = vector.broadcast %288 : vector<1x8x1xf32> to vector<4x8x2xf32>
    %290 = vector.broadcast %23 : vector<4x1x2xf32> to vector<4x8x2xf32>
    %291 = arith.mulf %289, %290 : vector<4x8x2xf32>
    %292 = arith.addf %286, %291 : vector<4x8x2xf32>
    %293 = vector.extract_strided_slice %21 {offsets = [6, 0, 0, 0], sizes = [1, 4, 8, 2], strides = [1, 1, 1, 1]} : vector<8x4x8x2xf32> to vector<1x4x8x2xf32>
    %294 = vector.shape_cast %293 : vector<1x4x8x2xf32> to vector<4x8x2xf32>
    %295 = arith.addf %294, %292 : vector<4x8x2xf32>
    %296 = vector.extract_strided_slice %295 {offsets = [0, 0, 0], sizes = [1, 8, 2], strides = [1, 1, 1]} : vector<4x8x2xf32> to vector<1x8x2xf32>
    %297 = vector.shape_cast %296 : vector<1x8x2xf32> to vector<8x2xf32>
    %298 = arith.negf %297 : vector<8x2xf32>
    %299 = math.exp %298 : vector<8x2xf32>
    %cst_25 = arith.constant 1.000000e+00 : f32
    %300 = vector.broadcast %cst_25 : f32 to vector<8x2xf32>
    %301 = arith.addf %300, %299 : vector<8x2xf32>
    %302 = arith.divf %300, %301 : vector<8x2xf32>
    %303 = vector.extract_strided_slice %295 {offsets = [1, 0, 0], sizes = [1, 8, 2], strides = [1, 1, 1]} : vector<4x8x2xf32> to vector<1x8x2xf32>
    %304 = vector.shape_cast %303 : vector<1x8x2xf32> to vector<8x2xf32>
    %305 = arith.negf %304 : vector<8x2xf32>
    %306 = math.exp %305 : vector<8x2xf32>
    %cst_26 = arith.constant 1.000000e+00 : f32
    %307 = vector.broadcast %cst_26 : f32 to vector<8x2xf32>
    %308 = arith.addf %307, %306 : vector<8x2xf32>
    %309 = arith.divf %307, %308 : vector<8x2xf32>
    %310 = vector.extract_strided_slice %295 {offsets = [2, 0, 0], sizes = [1, 8, 2], strides = [1, 1, 1]} : vector<4x8x2xf32> to vector<1x8x2xf32>
    %311 = vector.shape_cast %310 : vector<1x8x2xf32> to vector<8x2xf32>
    %312 = math.tanh %311 : vector<8x2xf32>
    %313 = vector.extract_strided_slice %295 {offsets = [3, 0, 0], sizes = [1, 8, 2], strides = [1, 1, 1]} : vector<4x8x2xf32> to vector<1x8x2xf32>
    %314 = vector.shape_cast %313 : vector<1x8x2xf32> to vector<8x2xf32>
    %315 = arith.negf %314 : vector<8x2xf32>
    %316 = math.exp %315 : vector<8x2xf32>
    %cst_27 = arith.constant 1.000000e+00 : f32
    %317 = vector.broadcast %cst_27 : f32 to vector<8x2xf32>
    %318 = arith.addf %317, %316 : vector<8x2xf32>
    %319 = arith.divf %317, %318 : vector<8x2xf32>
    %320 = arith.mulf %309, %279 : vector<8x2xf32>
    %321 = arith.mulf %302, %312 : vector<8x2xf32>
    %322 = arith.addf %320, %321 : vector<8x2xf32>
    %323 = math.tanh %322 : vector<8x2xf32>
    %324 = arith.mulf %319, %323 : vector<8x2xf32>
    %325 = vector.extract_strided_slice %324 {offsets = [0, 0], sizes = [8, 1], strides = [1, 1]} : vector<8x2xf32> to vector<8x1xf32>
    %326 = vector.shape_cast %325 : vector<8x1xf32> to vector<1x8x1xf32>
    %327 = vector.broadcast %326 : vector<1x8x1xf32> to vector<4x8x2xf32>
    %328 = vector.broadcast %22 : vector<4x1x2xf32> to vector<4x8x2xf32>
    %329 = arith.mulf %327, %328 : vector<4x8x2xf32>
    %330 = vector.extract_strided_slice %324 {offsets = [0, 1], sizes = [8, 1], strides = [1, 1]} : vector<8x2xf32> to vector<8x1xf32>
    %331 = vector.shape_cast %330 : vector<8x1xf32> to vector<1x8x1xf32>
    %332 = vector.broadcast %331 : vector<1x8x1xf32> to vector<4x8x2xf32>
    %333 = vector.broadcast %23 : vector<4x1x2xf32> to vector<4x8x2xf32>
    %334 = arith.mulf %332, %333 : vector<4x8x2xf32>
    %335 = arith.addf %329, %334 : vector<4x8x2xf32>
    %336 = vector.extract_strided_slice %21 {offsets = [7, 0, 0, 0], sizes = [1, 4, 8, 2], strides = [1, 1, 1, 1]} : vector<8x4x8x2xf32> to vector<1x4x8x2xf32>
    %337 = vector.shape_cast %336 : vector<1x4x8x2xf32> to vector<4x8x2xf32>
    %338 = arith.addf %337, %335 : vector<4x8x2xf32>
    %339 = vector.extract_strided_slice %338 {offsets = [0, 0, 0], sizes = [1, 8, 2], strides = [1, 1, 1]} : vector<4x8x2xf32> to vector<1x8x2xf32>
    %340 = vector.shape_cast %339 : vector<1x8x2xf32> to vector<8x2xf32>
    %341 = arith.negf %340 : vector<8x2xf32>
    %342 = math.exp %341 : vector<8x2xf32>
    %cst_28 = arith.constant 1.000000e+00 : f32
    %343 = vector.broadcast %cst_28 : f32 to vector<8x2xf32>
    %344 = arith.addf %343, %342 : vector<8x2xf32>
    %345 = arith.divf %343, %344 : vector<8x2xf32>
    %346 = vector.extract_strided_slice %338 {offsets = [1, 0, 0], sizes = [1, 8, 2], strides = [1, 1, 1]} : vector<4x8x2xf32> to vector<1x8x2xf32>
    %347 = vector.shape_cast %346 : vector<1x8x2xf32> to vector<8x2xf32>
    %348 = arith.negf %347 : vector<8x2xf32>
    %349 = math.exp %348 : vector<8x2xf32>
    %cst_29 = arith.constant 1.000000e+00 : f32
    %350 = vector.broadcast %cst_29 : f32 to vector<8x2xf32>
    %351 = arith.addf %350, %349 : vector<8x2xf32>
    %352 = arith.divf %350, %351 : vector<8x2xf32>
    %353 = vector.extract_strided_slice %338 {offsets = [2, 0, 0], sizes = [1, 8, 2], strides = [1, 1, 1]} : vector<4x8x2xf32> to vector<1x8x2xf32>
    %354 = vector.shape_cast %353 : vector<1x8x2xf32> to vector<8x2xf32>
    %355 = math.tanh %354 : vector<8x2xf32>
    %356 = vector.extract_strided_slice %338 {offsets = [3, 0, 0], sizes = [1, 8, 2], strides = [1, 1, 1]} : vector<4x8x2xf32> to vector<1x8x2xf32>
    %357 = vector.shape_cast %356 : vector<1x8x2xf32> to vector<8x2xf32>
    %358 = arith.negf %357 : vector<8x2xf32>
    %359 = math.exp %358 : vector<8x2xf32>
    %cst_30 = arith.constant 1.000000e+00 : f32
    %360 = vector.broadcast %cst_30 : f32 to vector<8x2xf32>
    %361 = arith.addf %360, %359 : vector<8x2xf32>
    %362 = arith.divf %360, %361 : vector<8x2xf32>
    %363 = arith.mulf %352, %322 : vector<8x2xf32>
    %364 = arith.mulf %345, %355 : vector<8x2xf32>
    %365 = arith.addf %363, %364 : vector<8x2xf32>
    %366 = math.tanh %365 : vector<8x2xf32>
    %367 = arith.mulf %362, %366 : vector<8x2xf32>
    %368 = vector.broadcast %5 : vector<1x2xf32> to vector<8x2xf32>
    %369 = arith.mulf %367, %368 : vector<8x2xf32>
    %cst_31 = arith.constant dense<0.000000e+00> : vector<8xf32>
    %370 = vector.multi_reduction <add>, %369, %cst_31 [1] : vector<8x2xf32> to vector<8xf32>
    %371 = vector.shape_cast %370 : vector<8xf32> to vector<8x1xf32>
    %372 = vector.broadcast %7 : vector<1x1xf32> to vector<8x1xf32>
    %373 = arith.addf %371, %372 : vector<8x1xf32>
    %374 = arith.negf %373 : vector<8x1xf32>
    %375 = math.exp %374 : vector<8x1xf32>
    %cst_32 = arith.constant 1.000000e+00 : f32
    %376 = vector.broadcast %cst_32 : f32 to vector<8x1xf32>
    %377 = arith.addf %376, %375 : vector<8x1xf32>
    %378 = arith.divf %376, %377 : vector<8x1xf32>
    %c0_33 = arith.constant 0 : index
    %c0_34 = arith.constant 0 : index
    %379 = vector.load %arg3[%c0_33, %c0_34] : memref<8x1xf32, #tpu.memory_space<vmem>>, vector<8x1xf32>
    tpu.vector_store %arg3[%c0_33, %c0_34], %378 {strides = array<i32>} : memref<8x1xf32, #tpu.memory_space<vmem>>, vector<8x1xf32>,
    return
  }
}

</mosaic_0001>

<bundles_post_ra>
// kernel: lstm_xor_forward.1
= control target key start
LH: loop header
LB: loop body
LE: loop exit
PB: predicated region body
PF: predicated region fallthrough
CT: control target
= control target key end

     0   :  { %v786_v0 = vmov 0   ;;  %v787_v2 = vmov 1   ;;  %v69_v5 = vlaneseq  ;;  %vm594_vm0 = vcmask 15360   ;;  %s1042_s0 = inlined_call_operand.vmem [shape: f32[8,8,1], index: 0, kind: input, shape index: {}]   ;;  %s1043_s2 = inlined_call_operand.vmem [shape: f32[2,8,2], index: 2, kind: input, shape index: {}]   ;;  %s1044_s1 = inlined_call_operand.vmem [shape: f32[5,4,2], index: 1, kind: input, shape index: {}]   ;;  %s1045_s3 = inlined_call_operand.vmem [shape: f32[8,1], index: 3, kind: output, shape index: {}]  }
   0x1   :  { %642 = vset.pattern.permute.xlu0 %v786_v0  ;;  %v19_v1 = vld [vmem:[%s1042_s0] sm:$0xff]  ;;  %643 = vset.pattern.permute.xlu1 %v787_v2  ;;  %v20_v4 = vld [vmem:[%s1042_s0 + $0x8] sm:$0xff]  ;;  %vm609_vm1 = vcmask 7168  }
   0x2   :  { %v27_v3 = vld [vmem:[%s1043_s2] sm:$0xff]  ;;  %31 = vperm.xlu0 %642, %v19_v1   ;;  %v70_v6 = vshrl.u32 %v69_v5, 7  ;;  %v17_v23 = vld [vmem:[%s1044_s1 + $0xc] sm:$0xf]  ;;  %v16_v38 = vld [vmem:[%s1044_s1 + $0x8] sm:$0xf] }
   0x3   :  { %191 = vperm.xlu1 %643, %v27_v3   ;;  %v14_v9 = vld [vmem:[%s1044_s1] sm:$0xf]  ;;  %v15_v10 = vld [vmem:[%s1044_s1 + $0x4] sm:$0xf]  ;;  %v28_v5 = vld [vmem:[%s1043_s2 + $0x8] sm:$0xff] }
   0x4   :  { %v71_v7 = vsub.s32 2, %v70_v6  ;;  %v821_v8 = vsub.s32 1, %v70_v6  ;;  %v829_v11 = vsub.s32 0, %v70_v6  ;;  %v119_v12 = vsub.s32 3, %v70_v6 }
   0x6   :  { %167 = vperm.xlu0 %642, %v27_v3   ;;  %v831_v13 = vrot.slane %v14_v9, %v71_v7  ;;  %v833_v14 = vrot.slane %v15_v10, %v71_v7  ;;  %v836_v15 = vrot.slane %v14_v9, %v821_v8  ;;  %v839_v16 = vrot.slane %v15_v10, %v821_v8 }
   0x7   :  { %644 = vset.pattern.permute.xlu1 %v786_v0  ;;  %v842_v19 = vrot.slane %v14_v9, %v829_v11  ;;  %v845_v20 = vrot.slane %v15_v10, %v829_v11  ;;  %v847_v21 = vrot.slane %v14_v9, %v119_v12  ;;  %v849_v22 = vrot.slane %v15_v10, %v119_v12 }
   0x8   :  { %36 = vperm.xlu1 %644, %v20_v4   ;;  %v859_v28 = vrot.slane %v17_v23, %v821_v8  ;;  %v862_v29 = vrot.slane %v17_v23, %v829_v11  ;;  %v866_v33 = vrot.slane %v17_v23, %v71_v7  ;;  %v876_v41 = vrot.slane %v16_v38, %v821_v8 }
   0x9   :  { %v879_v42 = vrot.slane %v16_v38, %v829_v11  ;;  %v881_v45 = vrot.slane %v17_v23, %v119_v12  ;;  %v884_v47 = vrot.slane %v16_v38, %v71_v7  ;;  %v889_v54 = vrot.slane %v16_v38, %v119_v12 }
   0xc   :  { %645 = vset.pattern.permute.xlu1 %v787_v2 }
  0x81   :  { %v32_v17 = vpop.permute.xlu0 %31 }
  0x82   :  { %v192_v18 = vpop.permute.xlu1 %191  ;;  %v85_v24 = vmul.f32 %v831_v13, %v32_v17  ;;  %v86_v25 = vmul.f32 %v833_v14, %v32_v17  ;;  %v88_v46 = vmul.f32 %v866_v33, %v32_v17  ;;  %v87_v55 = vmul.f32 %v884_v47, %v32_v17 }
  0x83   :  { %v210_v26 = vmul.f32 %v836_v15, %v192_v18  ;;  %v211_v27 = vmul.f32 %v839_v16, %v192_v18  ;;  %v213_v39 = vmul.f32 %v859_v28, %v192_v18  ;;  %v212_v51 = vmul.f32 %v876_v41, %v192_v18 }
  0x84   :  { %v133_v34 = vadd.f32 %v847_v21, %v85_v24  ;;  %v134_v35 = vadd.f32 %v849_v22, %v86_v25  ;;  %v136_v53 = vadd.f32 %v881_v45, %v88_v46  ;;  %v135_v58 = vadd.f32 %v889_v54, %v87_v55  ;;  %v21_v25 = vld [vmem:[%s1042_s0 + $0x10] sm:$0xff] }
  0x85   :  { %v168_v30 = vpop.permute.xlu0 %167 }
  0x86   :  { %v186_v31 = vmul.f32 %v842_v19, %v168_v30  ;;  %v187_v32 = vmul.f32 %v845_v20, %v168_v30  ;;  %v189_v40 = vmul.f32 %v862_v29, %v168_v30  ;;  %v188_v52 = vmul.f32 %v879_v42, %v168_v30 }
  0x88   :  { %v214_v36 = vadd.f32 %v210_v26, %v186_v31  ;;  %v215_v37 = vadd.f32 %v211_v27, %v187_v32  ;;  %v217_v50 = vadd.f32 %v213_v39, %v189_v40  ;;  %v216_v57 = vadd.f32 %v212_v51, %v188_v52  ;;  %v37_v26 = vpop.permute.xlu1 %36 }
  0x89   :  { %v89_v27 = vmul.f32 %v831_v13, %v37_v26  ;;  %v90_v30 = vmul.f32 %v833_v14, %v37_v26 }
  0x8a   :  { %v218_v43 = vadd.f32 %v214_v36, %v133_v34  ;;  %v219_v44 = vadd.f32 %v215_v37, %v134_v35  ;;  %v221_v56 = vadd.f32 %v217_v50, %v136_v53  ;;  %v220_v60 = vadd.f32 %v216_v57, %v135_v58 }
  0x8b   :  { %v137_v38 = vadd.f32 %v847_v21, %v89_v27  ;;  %v138_v39 = vadd.f32 %v849_v22, %v90_v30  ;;  %v92_v50 = vmul.f32 %v866_v33, %v37_v26  ;;  %v91_v58 = vmul.f32 %v884_v47, %v37_v26  ;;  %v22_v30 = vld [vmem:[%s1042_s0 + $0x18] sm:$0xff] }
  0x8c   :  { %v615_v48 = vmul.f32 -1.442695, %v218_v43  ;;  %v616_v49 = vmul.f32 -1.442695, %v219_v44  ;;  %v617_v59 = vmul.f32 -1.442695, %v221_v56 }
  0x8d   :  { %v140_v57 = vadd.f32 %v881_v45, %v92_v50 }
  0x8e   :  { %654 = vpow2.f32 %v615_v48 }
  0x8f   :  { %656 = vpow2.f32 %v616_v49 }
  0x90   :  { %658 = vpow2.f32 %v617_v59 }
  0x91   :  { %660 = vtanh.f32 %v220_v60 }
  0x98   :  { %v655_v61 = vpop.eup %654 }
  0x99   :  { %v657_v62 = vpop.eup %656  ;;  %v225_v63 = vadd.f32 1.0, %v655_v61  ;;  %v139_v61 = vadd.f32 %v889_v54, %v91_v58 }
  0x9a   :  { %v231_v1 = vadd.f32 1.0, %v657_v62  ;;  %v659_v3 = vpop.eup %658 }
  0x9b   :  { %662 = vrcp.f32 %v225_v63  ;;  %v661_v4 = vpop.eup %660  ;;  %v238_v9 = vadd.f32 1.0, %v659_v3 }
  0x9c   :  { %664 = vrcp.f32 %v231_v1 }
  0x9d   :  { %666 = vrcp.f32 %v238_v9 }
  0xa5   :  { %v663_v6 = vpop.eup %662 }
  0xa6   :  { %v665_v7 = vpop.eup %664  ;;  %v242_v10 = vmul.f32 %v663_v6, %v661_v4 }
  0xa7   :  { %v241_v12 = vmul.f32 %v665_v7, %v28_v5  ;;  %v667_v18 = vpop.eup %666 }
  0xa9   :  { %v243_v17 = vadd.f32 %v242_v10, %v241_v12 }
  0xab   :  { %668 = vtanh.f32 %v243_v17 }
  0xb5   :  { %v669_v23 = vpop.eup %668 }
  0xb6   :  { %v245_v24 = vmul.f32 %v669_v23, %v667_v18 }
  0xb8   :  { %256 = vperm.xlu1 %645, %v245_v24   ;;  %248 = vperm.xlu0 %642, %v245_v24  }
  0xbc   :  { %41 = vperm.xlu0 %642, %v21_v25   ;;  %646 = vset.pattern.permute.xlu1 %v786_v0 }
  0xc0   :  { %647 = vset.pattern.permute.xlu0 %v787_v2 }
 0x137   :  { %v257_v31 = vpop.permute.xlu1 %256  ;;  %v249_v32 = vpop.permute.xlu0 %248 }
 0x138   :  { %v259_v34 = vmul.f32 %v257_v31, %v836_v15  ;;  %v260_v35 = vmul.f32 %v257_v31, %v839_v16  ;;  %v251_v36 = vmul.f32 %v249_v32, %v842_v19  ;;  %v252_v37 = vmul.f32 %v249_v32, %v845_v20 }
 0x139   :  { %v262_v44 = vmul.f32 %v257_v31, %v859_v28  ;;  %v254_v46 = vmul.f32 %v249_v32, %v862_v29  ;;  %v261_v55 = vmul.f32 %v257_v31, %v876_v41  ;;  %v253_v56 = vmul.f32 %v249_v32, %v879_v42 }
 0x13a   :  { %v263_v40 = vadd.f32 %v259_v34, %v251_v36  ;;  %v264_v43 = vadd.f32 %v260_v35, %v252_v37 }
 0x13b   :  { %v266_v53 = vadd.f32 %v262_v44, %v254_v46  ;;  %v265_v60 = vadd.f32 %v261_v55, %v253_v56  ;;  %v42_v31 = vpop.permute.xlu0 %41 }
 0x13c   :  { %v267_v48 = vadd.f32 %v263_v40, %v137_v38  ;;  %v268_v49 = vadd.f32 %v264_v43, %v138_v39  ;;  %v93_v32 = vmul.f32 %v831_v13, %v42_v31  ;;  %v94_v34 = vmul.f32 %v833_v14, %v42_v31 }
 0x13d   :  { %v270_v59 = vadd.f32 %v266_v53, %v140_v57  ;;  %v269_v63 = vadd.f32 %v265_v60, %v139_v61  ;;  %v95_v60 = vmul.f32 %v884_v47, %v42_v31 }
 0x13e   :  { %v618_v51 = vmul.f32 -1.442695, %v267_v48  ;;  %v619_v52 = vmul.f32 -1.442695, %v268_v49  ;;  %v141_v40 = vadd.f32 %v847_v21, %v93_v32  ;;  %v142_v43 = vadd.f32 %v849_v22, %v94_v34  ;;  %v23_v34 = vld [vmem:[%s1042_s0 + $0x20] sm:$0xff] }
 0x13f   :  { %v620_v62 = vmul.f32 -1.442695, %v270_v59 }
 0x140   :  { %670 = vpow2.f32 %v618_v51 }
 0x141   :  { %672 = vpow2.f32 %v619_v52  ;;  %v96_v52 = vmul.f32 %v866_v33, %v42_v31 }
 0x142   :  { %674 = vpow2.f32 %v620_v62 }
 0x143   :  { %676 = vtanh.f32 %v269_v63  ;;  %v144_v59 = vadd.f32 %v881_v45, %v96_v52  ;;  %v143_v63 = vadd.f32 %v889_v54, %v95_v60 }
 0x14a   :  { %v671_v1 = vpop.eup %670 }
 0x14b   :  { %v673_v3 = vpop.eup %672  ;;  %v274_v4 = vadd.f32 1.0, %v671_v1 }
 0x14c   :  { %v280_v5 = vadd.f32 1.0, %v673_v3  ;;  %v675_v6 = vpop.eup %674 }
 0x14d   :  { %678 = vrcp.f32 %v274_v4  ;;  %v677_v7 = vpop.eup %676  ;;  %v287_v12 = vadd.f32 1.0, %v675_v6 }
 0x14e   :  { %680 = vrcp.f32 %v280_v5 }
 0x14f   :  { %682 = vrcp.f32 %v287_v12 }
 0x157   :  { %v679_v9 = vpop.eup %678 }
 0x158   :  { %v681_v10 = vpop.eup %680  ;;  %v291_v18 = vmul.f32 %v679_v9, %v677_v7 }
 0x159   :  { %v290_v23 = vmul.f32 %v681_v10, %v243_v17  ;;  %v683_v25 = vpop.eup %682 }
 0x15b   :  { %v292_v24 = vadd.f32 %v291_v18, %v290_v23 }
 0x15d   :  { %684 = vtanh.f32 %v292_v24 }
 0x167   :  { %v685_v26 = vpop.eup %684 }
 0x168   :  { %v294_v27 = vmul.f32 %v685_v26, %v683_v25 }
 0x16a   :  { %305 = vperm.xlu0 %647, %v294_v27   ;;  %297 = vperm.xlu1 %646, %v294_v27  }
 0x16e   :  { %46 = vperm.xlu1 %646, %v22_v30  }
 0x1e9   :  { %v298_v35 = vpop.permute.xlu1 %297  ;;  %v306_v17 = vpop.permute.xlu0 %305 }
 0x1ea   :  { %v300_v36 = vmul.f32 %v298_v35, %v842_v19  ;;  %v301_v37 = vmul.f32 %v298_v35, %v845_v20  ;;  %v308_v38 = vmul.f32 %v306_v17, %v836_v15  ;;  %v309_v39 = vmul.f32 %v306_v17, %v839_v16 }
 0x1eb   :  { %v303_v48 = vmul.f32 %v298_v35, %v862_v29  ;;  %v311_v49 = vmul.f32 %v306_v17, %v859_v28  ;;  %v302_v57 = vmul.f32 %v298_v35, %v879_v42  ;;  %v310_v58 = vmul.f32 %v306_v17, %v876_v41 }
 0x1ec   :  { %v312_v44 = vadd.f32 %v308_v38, %v300_v36  ;;  %v313_v46 = vadd.f32 %v309_v39, %v301_v37 }
 0x1ed   :  { %v315_v56 = vadd.f32 %v311_v49, %v303_v48  ;;  %v314_v62 = vadd.f32 %v310_v58, %v302_v57  ;;  %v47_v35 = vpop.permute.xlu1 %46 }
 0x1ee   :  { %v316_v50 = vadd.f32 %v312_v44, %v141_v40  ;;  %v317_v51 = vadd.f32 %v313_v46, %v142_v43  ;;  %v98_v17 = vmul.f32 %v833_v14, %v47_v35 }
 0x1ef   :  { %v319_v61 = vadd.f32 %v315_v56, %v144_v59  ;;  %v318_v3 = vadd.f32 %v314_v62, %v143_v63  ;;  %v99_v62 = vmul.f32 %v884_v47, %v47_v35 }
 0x1f0   :  { %v621_v53 = vmul.f32 -1.442695, %v316_v50  ;;  %v622_v55 = vmul.f32 -1.442695, %v317_v51  ;;  %v146_v46 = vadd.f32 %v849_v22, %v98_v17  ;;  %v24_v17 = vld [vmem:[%s1042_s0 + $0x28] sm:$0xff] }
 0x1f1   :  { %v623_v1 = vmul.f32 -1.442695, %v319_v61 }
 0x1f2   :  { %686 = vpow2.f32 %v621_v53 }
 0x1f3   :  { %688 = vpow2.f32 %v622_v55  ;;  %v100_v55 = vmul.f32 %v866_v33, %v47_v35 }
 0x1f4   :  { %690 = vpow2.f32 %v623_v1 }
 0x1f5   :  { %692 = vtanh.f32 %v318_v3  ;;  %v148_v61 = vadd.f32 %v881_v45, %v100_v55  ;;  %v147_v3 = vadd.f32 %v889_v54, %v99_v62 }
 0x1fc   :  { %v687_v4 = vpop.eup %686 }
 0x1fd   :  { %v689_v5 = vpop.eup %688  ;;  %v323_v6 = vadd.f32 1.0, %v687_v4 }
 0x1fe   :  { %v329_v7 = vadd.f32 1.0, %v689_v5  ;;  %v691_v9 = vpop.eup %690 }
 0x1ff   :  { %694 = vrcp.f32 %v323_v6  ;;  %v693_v10 = vpop.eup %692  ;;  %v336_v23 = vadd.f32 1.0, %v691_v9 }
 0x200   :  { %696 = vrcp.f32 %v329_v7 }
 0x201   :  { %698 = vrcp.f32 %v336_v23 }
 0x209   :  { %v695_v12 = vpop.eup %694 }
 0x20a   :  { %v697_v18 = vpop.eup %696  ;;  %v340_v25 = vmul.f32 %v695_v12, %v693_v10 }
 0x20b   :  { %v339_v26 = vmul.f32 %v697_v18, %v292_v24  ;;  %v699_v30 = vpop.eup %698  ;;  %v97_v24 = vmul.f32 %v831_v13, %v47_v35 }
 0x20d   :  { %v341_v27 = vadd.f32 %v340_v25, %v339_v26  ;;  %v145_v44 = vadd.f32 %v847_v21, %v97_v24 }
 0x20f   :  { %700 = vtanh.f32 %v341_v27 }
 0x219   :  { %v701_v31 = vpop.eup %700 }
 0x21a   :  { %v343_v32 = vmul.f32 %v701_v31, %v699_v30 }
 0x21c   :  { %354 = vperm.xlu0 %647, %v343_v32   ;;  %346 = vperm.xlu1 %646, %v343_v32  }
 0x220   :  { %51 = vperm.xlu1 %646, %v23_v34   ;;  %648 = vset.pattern.permute.xlu0 %v786_v0 }
 0x224   :  { %649 = vset.pattern.permute.xlu1 %v787_v2 }
 0x29b   :  { %v355_v36 = vpop.permute.xlu0 %354  ;;  %v347_v37 = vpop.permute.xlu1 %346 }
 0x29c   :  { %v357_v38 = vmul.f32 %v355_v36, %v836_v15  ;;  %v358_v39 = vmul.f32 %v355_v36, %v839_v16  ;;  %v349_v40 = vmul.f32 %v347_v37, %v842_v19  ;;  %v350_v43 = vmul.f32 %v347_v37, %v845_v20 }
 0x29d   :  { %v360_v50 = vmul.f32 %v355_v36, %v859_v28  ;;  %v352_v51 = vmul.f32 %v347_v37, %v862_v29  ;;  %v359_v59 = vmul.f32 %v355_v36, %v876_v41  ;;  %v351_v60 = vmul.f32 %v347_v37, %v879_v42 }
 0x29e   :  { %v361_v48 = vadd.f32 %v357_v38, %v349_v40  ;;  %v362_v49 = vadd.f32 %v358_v39, %v350_v43 }
 0x29f   :  { %v364_v58 = vadd.f32 %v360_v50, %v352_v51  ;;  %v363_v1 = vadd.f32 %v359_v59, %v351_v60  ;;  %v52_v36 = vpop.permute.xlu1 %51 }
 0x2a0   :  { %v365_v52 = vadd.f32 %v361_v48, %v145_v44  ;;  %v366_v53 = vadd.f32 %v362_v49, %v146_v46  ;;  %v102_v37 = vmul.f32 %v833_v14, %v52_v36 }
 0x2a1   :  { %v368_v63 = vadd.f32 %v364_v58, %v148_v61  ;;  %v367_v5 = vadd.f32 %v363_v1, %v147_v3  ;;  %v103_v1 = vmul.f32 %v884_v47, %v52_v36 }
 0x2a2   :  { %v624_v56 = vmul.f32 -1.442695, %v365_v52  ;;  %v625_v57 = vmul.f32 -1.442695, %v366_v53  ;;  %v150_v49 = vadd.f32 %v849_v22, %v102_v37  ;;  %v25_v37 = vld [vmem:[%s1042_s0 + $0x30] sm:$0xff] }
 0x2a3   :  { %v626_v4 = vmul.f32 -1.442695, %v368_v63 }
 0x2a4   :  { %702 = vpow2.f32 %v624_v56 }
 0x2a5   :  { %704 = vpow2.f32 %v625_v57  ;;  %v104_v57 = vmul.f32 %v866_v33, %v52_v36 }
 0x2a6   :  { %706 = vpow2.f32 %v626_v4 }
 0x2a7   :  { %708 = vtanh.f32 %v367_v5  ;;  %v152_v63 = vadd.f32 %v881_v45, %v104_v57  ;;  %v151_v5 = vadd.f32 %v889_v54, %v103_v1 }
 0x2ae   :  { %v703_v6 = vpop.eup %702 }
 0x2af   :  { %v705_v7 = vpop.eup %704  ;;  %v372_v9 = vadd.f32 1.0, %v703_v6 }
 0x2b0   :  { %v378_v10 = vadd.f32 1.0, %v705_v7  ;;  %v707_v12 = vpop.eup %706 }
 0x2b1   :  { %710 = vrcp.f32 %v372_v9  ;;  %v709_v18 = vpop.eup %708  ;;  %v385_v26 = vadd.f32 1.0, %v707_v12 }
 0x2b2   :  { %712 = vrcp.f32 %v378_v10 }
 0x2b3   :  { %714 = vrcp.f32 %v385_v26 }
 0x2bb   :  { %v711_v23 = vpop.eup %710 }
 0x2bc   :  { %v713_v25 = vpop.eup %712  ;;  %v389_v30 = vmul.f32 %v711_v23, %v709_v18 }
 0x2bd   :  { %v388_v31 = vmul.f32 %v713_v25, %v341_v27  ;;  %v715_v34 = vpop.eup %714  ;;  %v101_v27 = vmul.f32 %v831_v13, %v52_v36 }
 0x2bf   :  { %v390_v32 = vadd.f32 %v389_v30, %v388_v31  ;;  %v149_v48 = vadd.f32 %v847_v21, %v101_v27 }
 0x2c1   :  { %716 = vtanh.f32 %v390_v32 }
 0x2cb   :  { %v717_v35 = vpop.eup %716 }
 0x2cc   :  { %v392_v24 = vmul.f32 %v717_v35, %v715_v34 }
 0x2ce   :  { %403 = vperm.xlu1 %649, %v392_v24   ;;  %395 = vperm.xlu0 %648, %v392_v24  }
 0x2d2   :  { %650 = vset.pattern.permute.xlu1 %v786_v0 }
 0x2d3   :  { %56 = vperm.xlu1 %650, %v24_v17  }
 0x2d7   :  { %651 = vset.pattern.permute.xlu1 %v787_v2 }
 0x34d   :  { %v396_v38 = vpop.permute.xlu0 %395  ;;  %v404_v39 = vpop.permute.xlu1 %403 }
 0x34e   :  { %v398_v40 = vmul.f32 %v396_v38, %v842_v19  ;;  %v399_v43 = vmul.f32 %v396_v38, %v845_v20  ;;  %v406_v44 = vmul.f32 %v404_v39, %v836_v15  ;;  %v407_v46 = vmul.f32 %v404_v39, %v839_v16 }
 0x34f   :  { %v401_v52 = vmul.f32 %v396_v38, %v862_v29  ;;  %v409_v53 = vmul.f32 %v404_v39, %v859_v28  ;;  %v400_v61 = vmul.f32 %v396_v38, %v879_v42  ;;  %v408_v62 = vmul.f32 %v404_v39, %v876_v41 }
 0x350   :  { %v410_v50 = vadd.f32 %v406_v44, %v398_v40  ;;  %v411_v51 = vadd.f32 %v407_v46, %v399_v43 }
 0x351   :  { %v413_v60 = vadd.f32 %v409_v53, %v401_v52  ;;  %v412_v4 = vadd.f32 %v408_v62, %v400_v61 }
 0x352   :  { %v414_v55 = vadd.f32 %v410_v50, %v149_v48  ;;  %v415_v56 = vadd.f32 %v411_v51, %v150_v49  ;;  %v57_v38 = vpop.permute.xlu1 %56 }
 0x353   :  { %v417_v3 = vadd.f32 %v413_v60, %v152_v63  ;;  %v416_v7 = vadd.f32 %v412_v4, %v151_v5  ;;  %v106_v39 = vmul.f32 %v833_v14, %v57_v38  ;;  %v108_v57 = vmul.f32 %v866_v33, %v57_v38 }
 0x354   :  { %v627_v58 = vmul.f32 -1.442695, %v414_v55  ;;  %v628_v59 = vmul.f32 -1.442695, %v415_v56  ;;  %v107_v1 = vmul.f32 %v884_v47, %v57_v38 }
 0x355   :  { %v629_v6 = vmul.f32 -1.442695, %v417_v3  ;;  %v156_v63 = vadd.f32 %v881_v45, %v108_v57 }
 0x356   :  { %718 = vpow2.f32 %v627_v58  ;;  %v155_v5 = vadd.f32 %v889_v54, %v107_v1 }
 0x357   :  { %720 = vpow2.f32 %v628_v59 }
 0x358   :  { %722 = vpow2.f32 %v629_v6 }
 0x359   :  { %724 = vtanh.f32 %v416_v7 }
 0x360   :  { %v719_v9 = vpop.eup %718 }
 0x361   :  { %v721_v10 = vpop.eup %720  ;;  %v421_v12 = vadd.f32 1.0, %v719_v9 }
 0x362   :  { %v427_v18 = vadd.f32 1.0, %v721_v10  ;;  %v723_v23 = vpop.eup %722 }
 0x363   :  { %726 = vrcp.f32 %v421_v12  ;;  %v725_v25 = vpop.eup %724  ;;  %v434_v31 = vadd.f32 1.0, %v723_v23 }
 0x364   :  { %728 = vrcp.f32 %v427_v18 }
 0x365   :  { %730 = vrcp.f32 %v434_v31 }
 0x36d   :  { %v727_v26 = vpop.eup %726 }
 0x36e   :  { %v729_v30 = vpop.eup %728  ;;  %v438_v34 = vmul.f32 %v727_v26, %v725_v25 }
 0x36f   :  { %v437_v35 = vmul.f32 %v729_v30, %v390_v32  ;;  %v731_v17 = vpop.eup %730  ;;  %v105_v32 = vmul.f32 %v831_v13, %v57_v38  ;;  %v26_v38 = vld [vmem:[%s1042_s0 + $0x38] sm:$0xff] }
 0x371   :  { %v439_v24 = vadd.f32 %v438_v34, %v437_v35  ;;  %v153_v50 = vadd.f32 %v847_v21, %v105_v32 }
 0x373   :  { %732 = vtanh.f32 %v439_v24 }
 0x37d   :  { %v733_v36 = vpop.eup %732 }
 0x37e   :  { %v441_v27 = vmul.f32 %v733_v36, %v731_v17 }
 0x380   :  { %452 = vperm.xlu1 %651, %v441_v27   ;;  %444 = vperm.xlu0 %648, %v441_v27  }
 0x384   :  { %61 = vperm.xlu0 %648, %v25_v37   ;;  %652 = vset.pattern.permute.xlu1 %v786_v0  ;;  %v154_v0 = vadd.f32 %v849_v22, %v106_v39 }
 0x388   :  { %653 = vset.pattern.permute.xlu0 %v787_v2 }
 0x3ff   :  { %v445_v40 = vpop.permute.xlu0 %444  ;;  %v453_v43 = vpop.permute.xlu1 %452 }
 0x400   :  { %v447_v44 = vmul.f32 %v445_v40, %v842_v19  ;;  %v448_v46 = vmul.f32 %v445_v40, %v845_v20  ;;  %v455_v48 = vmul.f32 %v453_v43, %v836_v15  ;;  %v456_v49 = vmul.f32 %v453_v43, %v839_v16 }
 0x401   :  { %v450_v52 = vmul.f32 %v445_v40, %v862_v29  ;;  %v458_v53 = vmul.f32 %v453_v43, %v859_v28  ;;  %v449_v61 = vmul.f32 %v445_v40, %v879_v42  ;;  %v457_v62 = vmul.f32 %v453_v43, %v876_v41 }
 0x402   :  { %v459_v2 = vadd.f32 %v455_v48, %v447_v44  ;;  %v460_v51 = vadd.f32 %v456_v49, %v448_v46 }
 0x403   :  { %v462_v60 = vadd.f32 %v458_v53, %v450_v52  ;;  %v461_v4 = vadd.f32 %v457_v62, %v449_v61  ;;  %v62_v32 = vpop.permute.xlu0 %61 }
 0x404   :  { %v463_v55 = vadd.f32 %v459_v2, %v153_v50  ;;  %v464_v56 = vadd.f32 %v460_v51, %v154_v0  ;;  %v109_v39 = vmul.f32 %v831_v13, %v62_v32  ;;  %v110_v40 = vmul.f32 %v833_v14, %v62_v32 }
 0x405   :  { %v466_v3 = vadd.f32 %v462_v60, %v156_v63  ;;  %v465_v7 = vadd.f32 %v461_v4, %v155_v5  ;;  %v112_v57 = vmul.f32 %v866_v33, %v62_v32  ;;  %v111_v1 = vmul.f32 %v884_v47, %v62_v32 }
 0x406   :  { %v630_v58 = vmul.f32 -1.442695, %v463_v55  ;;  %v631_v59 = vmul.f32 -1.442695, %v464_v56  ;;  %v157_v50 = vadd.f32 %v847_v21, %v109_v39  ;;  %v158_v0 = vadd.f32 %v849_v22, %v110_v40 }
 0x407   :  { %v632_v6 = vmul.f32 -1.442695, %v466_v3  ;;  %v160_v63 = vadd.f32 %v881_v45, %v112_v57  ;;  %v159_v5 = vadd.f32 %v889_v54, %v111_v1 }
 0x408   :  { %734 = vpow2.f32 %v630_v58 }
 0x409   :  { %736 = vpow2.f32 %v631_v59 }
 0x40a   :  { %738 = vpow2.f32 %v632_v6 }
 0x40b   :  { %740 = vtanh.f32 %v465_v7 }
 0x412   :  { %v735_v9 = vpop.eup %734 }
 0x413   :  { %v737_v10 = vpop.eup %736  ;;  %v470_v12 = vadd.f32 1.0, %v735_v9 }
 0x414   :  { %v476_v18 = vadd.f32 1.0, %v737_v10  ;;  %v739_v23 = vpop.eup %738 }
 0x415   :  { %742 = vrcp.f32 %v470_v12  ;;  %v741_v25 = vpop.eup %740  ;;  %v483_v31 = vadd.f32 1.0, %v739_v23 }
 0x416   :  { %744 = vrcp.f32 %v476_v18 }
 0x417   :  { %746 = vrcp.f32 %v483_v31 }
 0x41f   :  { %v743_v26 = vpop.eup %742 }
 0x420   :  { %v745_v30 = vpop.eup %744  ;;  %v487_v34 = vmul.f32 %v743_v26, %v741_v25 }
 0x421   :  { %v486_v35 = vmul.f32 %v745_v30, %v439_v24  ;;  %v747_v36 = vpop.eup %746 }
 0x423   :  { %v488_v17 = vadd.f32 %v487_v34, %v486_v35 }
 0x425   :  { %748 = vtanh.f32 %v488_v17 }
 0x42f   :  { %v749_v27 = vpop.eup %748 }
 0x430   :  { %v490_v37 = vmul.f32 %v749_v27, %v747_v36 }
 0x432   :  { %501 = vperm.xlu0 %653, %v490_v37   ;;  %493 = vperm.xlu1 %652, %v490_v37  }
 0x436   :  { %66 = vperm.xlu1 %652, %v26_v38  }
 0x4b1   :  { %v502_v43 = vpop.permute.xlu0 %501  ;;  %v494_v24 = vpop.permute.xlu1 %493 }
 0x4b2   :  { %v504_v44 = vmul.f32 %v502_v43, %v836_v15  ;;  %v505_v46 = vmul.f32 %v502_v43, %v839_v16  ;;  %v496_v48 = vmul.f32 %v494_v24, %v842_v19  ;;  %v497_v49 = vmul.f32 %v494_v24, %v845_v20 }
 0x4b3   :  { %v507_v52 = vmul.f32 %v502_v43, %v859_v28  ;;  %v499_v53 = vmul.f32 %v494_v24, %v862_v29  ;;  %v506_v61 = vmul.f32 %v502_v43, %v876_v41  ;;  %v498_v62 = vmul.f32 %v494_v24, %v879_v42 }
 0x4b4   :  { %v508_v2 = vadd.f32 %v504_v44, %v496_v48  ;;  %v509_v51 = vadd.f32 %v505_v46, %v497_v49 }
 0x4b5   :  { %v511_v60 = vadd.f32 %v507_v52, %v499_v53  ;;  %v510_v4 = vadd.f32 %v506_v61, %v498_v62  ;;  %v67_v32 = vpop.permute.xlu1 %66 }
 0x4b6   :  { %v512_v55 = vadd.f32 %v508_v2, %v157_v50  ;;  %v513_v56 = vadd.f32 %v509_v51, %v158_v0  ;;  %v113_v39 = vmul.f32 %v831_v13, %v67_v32  ;;  %v114_v40 = vmul.f32 %v833_v14, %v67_v32 }
 0x4b7   :  { %v515_v3 = vadd.f32 %v511_v60, %v160_v63  ;;  %v514_v7 = vadd.f32 %v510_v4, %v159_v5 }
 0x4b8   :  { %v633_v58 = vmul.f32 -1.442695, %v512_v55  ;;  %v634_v59 = vmul.f32 -1.442695, %v513_v56  ;;  %v161_v49 = vadd.f32 %v847_v21, %v113_v39  ;;  %v162_v50 = vadd.f32 %v849_v22, %v114_v40 }
 0x4b9   :  { %v635_v6 = vmul.f32 -1.442695, %v515_v3  ;;  %v115_v22 = vmul.f32 %v884_v47, %v67_v32 }
 0x4ba   :  { %750 = vpow2.f32 %v633_v58 }
 0x4bb   :  { %752 = vpow2.f32 %v634_v59 }
 0x4bc   :  { %754 = vpow2.f32 %v635_v6 }
 0x4bd   :  { %756 = vtanh.f32 %v514_v7 }
 0x4c4   :  { %v751_v9 = vpop.eup %750 }
 0x4c5   :  { %v753_v10 = vpop.eup %752  ;;  %v519_v12 = vadd.f32 1.0, %v751_v9 }
 0x4c6   :  { %v525_v18 = vadd.f32 1.0, %v753_v10  ;;  %v755_v23 = vpop.eup %754 }
 0x4c7   :  { %758 = vrcp.f32 %v519_v12  ;;  %v757_v25 = vpop.eup %756  ;;  %v532_v31 = vadd.f32 1.0, %v755_v23 }
 0x4c8   :  { %760 = vrcp.f32 %v525_v18 }
 0x4c9   :  { %762 = vrcp.f32 %v532_v31 }
 0x4d1   :  { %v759_v26 = vpop.eup %758 }
 0x4d2   :  { %v761_v30 = vpop.eup %760  ;;  %v536_v34 = vmul.f32 %v759_v26, %v757_v25 }
 0x4d3   :  { %v535_v35 = vmul.f32 %v761_v30, %v488_v17  ;;  %v763_v27 = vpop.eup %762 }
 0x4d5   :  { %v537_v36 = vadd.f32 %v536_v34, %v535_v35 }
 0x4d7   :  { %764 = vtanh.f32 %v537_v36 }
 0x4e1   :  { %v765_v37 = vpop.eup %764 }
 0x4e2   :  { %v539_v38 = vmul.f32 %v765_v37, %v763_v27 }
 0x4e4   :  { %550 = vperm.xlu0 %653, %v539_v38   ;;  %542 = vperm.xlu1 %652, %v539_v38  }
 0x563   :  { %v551_v43 = vpop.permute.xlu0 %550  ;;  %v543_v24 = vpop.permute.xlu1 %542 }
 0x564   :  { %v553_v44 = vmul.f32 %v551_v43, %v836_v15  ;;  %v554_v46 = vmul.f32 %v551_v43, %v839_v16  ;;  %v545_v17 = vmul.f32 %v543_v24, %v842_v19  ;;  %v546_v48 = vmul.f32 %v543_v24, %v845_v20 }
 0x565   :  { %v556_v13 = vmul.f32 %v551_v43, %v859_v28  ;;  %v548_v14 = vmul.f32 %v543_v24, %v862_v29  ;;  %v116_v15 = vmul.f32 %v866_v33, %v67_v32  ;;  %v555_v19 = vmul.f32 %v551_v43, %v876_v41 }
 0x566   :  { %v557_v0 = vadd.f32 %v553_v44, %v545_v17  ;;  %v558_v2 = vadd.f32 %v554_v46, %v546_v48  ;;  %v547_v20 = vmul.f32 %v543_v24, %v879_v42  ;;  %v163_v29 = vadd.f32 %v889_v54, %v115_v22  ;;  %v18_v54 = vld [vmem:[%s1044_s1 + $0x10] sm:$0xf] }
 0x567   :  { %v560_v55 = vadd.f32 %v556_v13, %v548_v14  ;;  %v164_v21 = vadd.f32 %v881_v45, %v116_v15  ;;  %v592_v5 = vrot.slane %v18_v54, %v829_v11  ;;  %v601_v12 = vrot.slane %v18_v54, %v821_v8 }
 0x568   :  { %v561_v51 = vadd.f32 %v557_v0, %v161_v49  ;;  %v562_v52 = vadd.f32 %v558_v2, %v162_v50  ;;  %v559_v56 = vadd.f32 %v555_v19, %v547_v20 }
 0x569   :  { %v564_v28 = vadd.f32 %v560_v55, %v164_v21 }
 0x56a   :  { %v636_v53 = vmul.f32 -1.442695, %v561_v51  ;;  %v637_v16 = vmul.f32 -1.442695, %v562_v52  ;;  %v563_v58 = vadd.f32 %v559_v56, %v163_v29 }
 0x56b   :  { %v638_v57 = vmul.f32 -1.442695, %v564_v28 }
 0x56c   :  { %766 = vpow2.f32 %v636_v53 }
 0x56d   :  { %768 = vpow2.f32 %v637_v16 }
 0x56e   :  { %770 = vpow2.f32 %v638_v57 }
 0x56f   :  { %772 = vtanh.f32 %v563_v58 }
 0x576   :  { %v767_v33 = vpop.eup %766 }
 0x577   :  { %v769_v59 = vpop.eup %768  ;;  %v568_v60 = vadd.f32 1.0, %v767_v33 }
 0x578   :  { %v574_v61 = vadd.f32 1.0, %v769_v59  ;;  %v771_v41 = vpop.eup %770 }
 0x579   :  { %774 = vrcp.f32 %v568_v60  ;;  %v773_v42 = vpop.eup %772  ;;  %v581_v63 = vadd.f32 1.0, %v771_v41 }
 0x57a   :  { %776 = vrcp.f32 %v574_v61 }
 0x57b   :  { %778 = vrcp.f32 %v581_v63 }
 0x583   :  { %v775_v45 = vpop.eup %774 }
 0x584   :  { %v777_v62 = vpop.eup %776  ;;  %v585_v47 = vmul.f32 %v775_v45, %v773_v42 }
 0x585   :  { %v584_v1 = vmul.f32 %v777_v62, %v537_v36  ;;  %v779_v4 = vpop.eup %778 }
 0x587   :  { %v586_v3 = vadd.f32 %v585_v47, %v584_v1 }
 0x589   :  { %780 = vtanh.f32 %v586_v3 }
 0x593   :  { %v781_v6 = vpop.eup %780 }
 0x594   :  { %v588_v7 = vmul.f32 %v781_v6, %v779_v4 }
 0x596   :  { %v593_v9 = vmul.f32 %v592_v5, %v588_v7 }
 0x598   :  { %v595_v10 = vsel %vm594_vm0, %v593_v9, 0.0 }
 0x599   :  { %596 = vadd.xlane.f32.xlu1 %v595_v10 }
 0x626   :  { %v597_v18 = vpop.xlane.xlu1 %596 }
 0x627   :  { %v602_v23 = vadd.f32 %v601_v12, %v597_v18 }
 0x629   :  { %v639_v25 = vmul.f32 -1.442695, %v602_v23 }
 0x62b   :  { %782 = vpow2.f32 %v639_v25 }
 0x635   :  { %v783_v26 = vpop.eup %782 }
 0x636   :  { %v606_v30 = vadd.f32 1.0, %v783_v26 }
 0x638   :  { %784 = vrcp.f32 %v606_v30 }
 0x642   :  { %v785_v31 = vpop.eup %784 }
 0x643   :  { %610 = vst.msk [vmem:[%s1045_s3] sm:$0xff] %vm609_vm1, %v785_v31 }

</bundles_post_ra>
